<compile_context>
chip_gen: v6e
topology: v6e:2x2x1
jax: 0.10.0
libtpu: 0.0.40
codegen_flags: <defaults>
</compile_context>

<pallas_src>
import functools

import jax
import jax.numpy as jnp
import numpy as np
from jax import lax
from jax.experimental import pallas as pl
from jax.experimental.pallas import tpu as pltpu


_NEG = -1e30                       # plain Python float -> jaxpr literal, never a captured const
_VMEM_LIMIT = 48 * 1024 * 1024     # <= v7x 64 MiB physical; > v5e 16 MiB default scoped limit


def _round_up(x, m):
    return (x + m - 1) // m * m


# ---------------------------------------------------------------------------
# Kernel 1 (prologue): per-row L2 normalization with 1/temperature folded into
# the image side, plus the per-row diagonal term diag[r] = <img_n[r], txt_n[r]>
# (== logits[r, r]).  O(B*D) work, fully parallel over row blocks.
# ---------------------------------------------------------------------------
def _normalize_diag_kernel(temp_ref, img_ref, txt_ref, img_out, txt_out, diag_out):
    inv_temp = 1.0 / temp_ref[0, 0]
    img = img_ref[...].astype(jnp.float32)
    txt = txt_ref[...].astype(jnp.float32)
    # F.normalize(x, 2, -1): x / max(||x||, 1e-12)  ==  x * rsqrt(max(||x||^2, 1e-24))
    img_scale = lax.rsqrt(jnp.maximum(jnp.sum(img * img, -1, keepdims=True), 1e-24)) * inv_temp
    txt_scale = lax.rsqrt(jnp.maximum(jnp.sum(txt * txt, -1, keepdims=True), 1e-24))
    img_n = img * img_scale            # 1/temperature folded in here (image side only)
    txt_n = txt * txt_scale
    diag_out[...] = jnp.sum(img_n * txt_n, -1, keepdims=True)   # f32 diagonal term
    img_out[...] = img_n.astype(img_out.dtype)
    txt_out[...] = txt_n.astype(txt_out.dtype)


def _normalize_and_diag(img, txt, temp, *, blk_n, out_dtype):
    b_pad, d_pad = img.shape
    nb = b_pad // blk_n
    return pl.pallas_call(
        _normalize_diag_kernel,
        out_shape=(jax.ShapeDtypeStruct((b_pad, d_pad), out_dtype),
                   jax.ShapeDtypeStruct((b_pad, d_pad), out_dtype),
                   jax.ShapeDtypeStruct((b_pad, 1), jnp.float32)),
        grid_spec=pltpu.PrefetchScalarGridSpec(
            num_scalar_prefetch=0,
            grid=(nb,),
            in_specs=[
                pl.BlockSpec(memory_space=pltpu.MemorySpace.SMEM),       # temperature (1,1)
                pl.BlockSpec((blk_n, d_pad), lambda i: (i, 0)),
                pl.BlockSpec((blk_n, d_pad), lambda i: (i, 0)),
            ],
            out_specs=[
                pl.BlockSpec((blk_n, d_pad), lambda i: (i, 0)),
                pl.BlockSpec((blk_n, d_pad), lambda i: (i, 0)),
                pl.BlockSpec((blk_n, 1), lambda i: (i, 0)),
            ],
        ),
        compiler_params=pltpu.CompilerParams(
            dimension_semantics=("parallel",),
            vmem_limit_bytes=_VMEM_LIMIT),
    )(temp, img, txt)


# ---------------------------------------------------------------------------
# Kernel 2 (hot loop): flash-style online logsumexp over the rows of
# rows @ cols.T, tiled (blk_i x blk_j).  Row blocks are "parallel" (each
# writes a disjoint output slice), the column axis streams sequentially.
# ---------------------------------------------------------------------------
def _lse_rows_kernel(row_ref, col_ref, lse_ref, m_scr, l_scr,
                     *, blk_j, b_true, col_padded):
    j = pl.program_id(1)

    @pl.when(j == 0)                       # new row block: reset the online state
    def _():
        m_scr[...] = jnp.full(m_scr.shape, _NEG, jnp.float32)
        l_scr[...] = jnp.zeros(l_scr.shape, jnp.float32)

    # Logits tile: contract the feature (lane) axis of BOTH operands — no
    # transpose of the column tile, f32 accumulation on the MXU.
    logits = lax.dot_general(row_ref[...], col_ref[...],
                             dimension_numbers=(((1,), (1,)), ((), ())),
                             preferred_element_type=jnp.float32)

    if col_padded:
        # Zero-padded column rows must not contribute to the LSE.  One
        # (1, blk_j) iota/compare, applied as a single broadcast add.
        cid = j * blk_j + lax.broadcasted_iota(jnp.int32, (1, blk_j), 1)
        logits = logits + jnp.where(cid < b_true, 0.0, _NEG)

    m_old = m_scr[...]
    m_new = jnp.maximum(m_old, jnp.max(logits, axis=-1, keepdims=True))
    p = jnp.exp(logits - m_new)            # the only full-tile exp (EUP)
    # Lane sum on the MXU (p @ ones) instead of a second XLU reduction;
    # only the row max above stays on the XLU.
    ones = jnp.ones((p.shape[1], 1), dtype=p.dtype)
    p_sum = lax.dot_general(p, ones, dimension_numbers=(((1,), (0,)), ((), ())),
                            preferred_element_type=jnp.float32)
    l_scr[...] = l_scr[...] * jnp.exp(m_old - m_new) + p_sum
    m_scr[...] = m_new

    @pl.when(j == pl.num_programs(1) - 1)  # finalize this row block
    def _():
        lse_ref[...] = m_scr[...] + jnp.log(l_scr[...])


def _row_lse(rows, cols, *, blk_i, blk_j, b_true):
    """Per-row logsumexp of rows @ cols.T (padded rows give finite garbage,
    sliced off by the caller)."""
    b_pad, d_pad = rows.shape
    ni, nj = b_pad // blk_i, b_pad // blk_j
    kernel = functools.partial(_lse_rows_kernel, blk_j=blk_j, b_true=b_true,
                               col_padded=(b_pad != b_true))
    return pl.pallas_call(
        kernel,
        out_shape=jax.ShapeDtypeStruct((b_pad, 1), jnp.float32),
        grid_spec=pltpu.PrefetchScalarGridSpec(
            num_scalar_prefetch=0,
            grid=(ni, nj),                                   # j innermost: cols stream
            in_specs=[
                # Row features: DMA'd once per row block (constant across j).
                pl.BlockSpec((blk_i, d_pad), lambda i, j: (i, 0)),
                # Column features: re-streamed ni times total; large blk_i keeps
                # ni (and hence this traffic + grid-step overhead) small.
                pl.BlockSpec((blk_j, d_pad), lambda i, j: (j, 0)),
            ],
            out_specs=pl.BlockSpec((blk_i, 1), lambda i, j: (i, 0)),
            scratch_shapes=[pltpu.VMEM((blk_i, 1), jnp.float32),   # running row max
                            pltpu.VMEM((blk_i, 1), jnp.float32)],  # running row sum
        ),
        compiler_params=pltpu.CompilerParams(
            # Row axis is embarrassingly parallel (disjoint outputs, scratch
            # reset at j == 0) -> megacore sharding on v7x; column axis carries
            # the online-LSE state.
            dimension_semantics=("parallel", "arbitrary"),
            vmem_limit_bytes=_VMEM_LIMIT),
    )(rows, cols)


def contrastive_loss(img_features, text_features, temperature, *,
                     block_rows=512, block_cols=256,
                     compute_dtype=jnp.bfloat16):
    """Pallas TPU implementation of ContrastiveLoss.forward. Returns a scalar f32.

    block_rows: row-block size of the streamed (B, B) logits (512-1024 recommended).
    block_cols: column-block size (256 fills the v6e/v7x MXU; use 128 on v5e).
    compute_dtype: dtype of the normalized features fed to the MXU / streamed
      from HBM (bf16 default; pass jnp.float32 for bit-tight accuracy).
    """
    assert img_features.shape == text_features.shape and img_features.ndim == 2
    b, d = img_features.shape

    d_pad = _round_up(d, 128)                       # lane-dense feature dim
    b8 = _round_up(b, 8)
    blk_j = min(int(block_cols), b8)
    blk_i = min(int(block_rows), _round_up(b, blk_j))
    blk_i = max(blk_j, (blk_i // blk_j) * blk_j)    # keep blk_i a multiple of blk_j
    b_pad = _round_up(b, blk_i)                     # divisible by blk_i and blk_j

    # Zero padding changes neither norms nor dot products; padded columns are
    # masked in-kernel, padded rows are sliced off below.
    img = jnp.pad(img_features, ((0, b_pad - b), (0, d_pad - d)))
    txt = jnp.pad(text_features, ((0, b_pad - b), (0, d_pad - d)))
    temp = jnp.asarray(temperature, dtype=jnp.float32).reshape(1, 1)

    out_dtype = jnp.dtype(compute_dtype) if compute_dtype is not None else img.dtype
    img_n, txt_n, diag = _normalize_and_diag(img, txt, temp,
                                             blk_n=blk_j, out_dtype=out_dtype)

    lse_img = _row_lse(img_n, txt_n, blk_i=blk_i, blk_j=blk_j, b_true=b)   # image -> text
    lse_txt = _row_lse(txt_n, img_n, blk_i=blk_i, blk_j=blk_j, b_true=b)   # text  -> image

    diag_sum = jnp.sum(diag[:b, 0])
    loss = (jnp.sum(lse_img[:b, 0]) + jnp.sum(lse_txt[:b, 0]) - 2.0 * diag_sum) / (2.0 * b)
    return loss


def contrastive_loss_ref(img_features, text_features, temperature):
    """Pure-JAX reference mirroring the PyTorch module."""
    eps = 1e-12
    img = img_features / jnp.maximum(
        jnp.linalg.norm(img_features, axis=-1, keepdims=True), eps)
    txt = text_features / jnp.maximum(
        jnp.linalg.norm(text_features, axis=-1, keepdims=True), eps)
    logits = img @ txt.T / temperature
    labels = jnp.arange(img.shape[0])
    lse_r = jax.scipy.special.logsumexp(logits, axis=-1)
    lse_c = jax.scipy.special.logsumexp(logits, axis=0)
    diag = logits[labels, labels]
    loss_img = jnp.mean(lse_r - diag)
    loss_text = jnp.mean(lse_c - diag)
    return 0.5 * (loss_img + loss_text)


if __name__ == "__main__":
    temperature = 0.07                     # module __init__ default parameter value
    key = jax.random.PRNGKey(0)

    # 1) Small case consistent with the module (batch=8 pairs, hidden=32),
    #    full-precision feature path.
    k_img, k_txt = jax.random.split(key)
    img1 = jax.random.normal(k_img, (8, 32), dtype=jnp.float32)
    txt1 = jax.random.normal(k_txt, (8, 32), dtype=jnp.float32)
    loss1 = jax.block_until_ready(
        contrastive_loss(img1, txt1, temperature, compute_dtype=jnp.float32))
    ref1 = contrastive_loss_ref(img1, txt1, temperature)
    np.testing.assert_allclose(np.asarray(loss1), np.asarray(ref1), rtol=1e-4, atol=1e-4)

    # 2) Multi-block online-LSE path with batch/feature padding
    #    (B=200 -> 256 with blk_i=128/blk_j=64, D=96 -> 128), f32 features.
    k2_img, k2_txt = jax.random.split(jax.random.PRNGKey(0), 2)
    img2 = jax.random.normal(k2_img, (200, 96), dtype=jnp.float32)
    txt2 = jax.random.normal(k2_txt, (200, 96), dtype=jnp.float32)
    loss2 = jax.block_until_ready(
        contrastive_loss(img2, txt2, temperature,
                         block_rows=128, block_cols=64, compute_dtype=jnp.float32))
    ref2 = contrastive_loss_ref(img2, txt2, temperature)
    np.testing.assert_allclose(np.asarray(loss2), np.asarray(ref2), rtol=1e-4, atol=1e-4)

    # 3) Default fast path (bf16 normalized features on the MXU / over DMA).
    k3_img, k3_txt = jax.random.split(jax.random.PRNGKey(1), 2)
    img3 = jax.random.normal(k3_img, (64, 128), dtype=jnp.float32)
    txt3 = jax.random.normal(k3_txt, (64, 128), dtype=jnp.float32)
    loss3 = jax.block_until_ready(contrastive_loss(img3, txt3, temperature))
    ref3 = contrastive_loss_ref(img3, txt3, temperature)
    np.testing.assert_allclose(np.asarray(loss3), np.asarray(ref3), rtol=2e-2, atol=2e-2)

    print("KERNEL_OK")
</pallas_src>

<mosaic_0001>
module attributes {stable_mosaic.version = 11 : i64} {
  func.func @_normalize_diag_kernel(%arg0: i32, %arg1: memref<1x1xf32, #tpu.memory_space<smem>>, %arg2: memref<8x128xf32, #tpu.memory_space<vmem>>, %arg3: memref<8x128xf32, #tpu.memory_space<vmem>>, %arg4: memref<8x128xf32, #tpu.memory_space<vmem>>, %arg5: memref<8x128xf32, #tpu.memory_space<vmem>>, %arg6: memref<8x1xf32, #tpu.memory_space<vmem>>) attributes {dimension_semantics = [#tpu.dimension_semantics<parallel>], iteration_bounds = array<i64: 1>, scalar_prefetch = 0 : i64, scratch_operands = 0 : i64, tpu.core_type = #tpu.core_type<tc>, window_params = [{transform_indices = @transform_0, window_bounds = array<i64: 1, 1>}, {transform_indices = @transform_1, window_bounds = array<i64: 8, 128>}, {transform_indices = @transform_2, window_bounds = array<i64: 8, 128>}, {transform_indices = @transform_3, window_bounds = array<i64: 8, 128>}, {transform_indices = @transform_4, window_bounds = array<i64: 8, 128>}, {transform_indices = @transform_5, window_bounds = array<i64: 8, 1>}]} {
    %c0 = arith.constant 0 : index
    %c0_0 = arith.constant 0 : index
    %0 = memref.load %arg1[%c0, %c0_0] : memref<1x1xf32, #tpu.memory_space<smem>>
    %cst = arith.constant 1.000000e+00 : f32
    %1 = arith.divf %cst, %0 : f32
    %c0_1 = arith.constant 0 : index
    %c0_2 = arith.constant 0 : index
    %2 = vector.load %arg2[%c0_1, %c0_2] : memref<8x128xf32, #tpu.memory_space<vmem>>, vector<8x128xf32>
    %c0_3 = arith.constant 0 : index
    %c0_4 = arith.constant 0 : index
    %3 = vector.load %arg3[%c0_3, %c0_4] : memref<8x128xf32, #tpu.memory_space<vmem>>, vector<8x128xf32>
    %4 = arith.mulf %2, %2 : vector<8x128xf32>
    %cst_5 = arith.constant dense<0.000000e+00> : vector<8xf32>
    %5 = vector.multi_reduction <add>, %4, %cst_5 [1] : vector<8x128xf32> to vector<8xf32>
    %6 = vector.shape_cast %5 : vector<8xf32> to vector<8x1xf32>
    %cst_6 = arith.constant 1.000000e-24 : f32
    %7 = vector.broadcast %cst_6 : f32 to vector<8x1xf32>
    %8 = arith.maximumf %6, %7 : vector<8x1xf32>
    %9 = math.rsqrt %8 : vector<8x1xf32>
    %10 = vector.broadcast %1 : f32 to vector<8x1xf32>
    %11 = arith.mulf %9, %10 : vector<8x1xf32>
    %12 = arith.mulf %3, %3 : vector<8x128xf32>
    %cst_7 = arith.constant dense<0.000000e+00> : vector<8xf32>
    %13 = vector.multi_reduction <add>, %12, %cst_7 [1] : vector<8x128xf32> to vector<8xf32>
    %14 = vector.shape_cast %13 : vector<8xf32> to vector<8x1xf32>
    %cst_8 = arith.constant 1.000000e-24 : f32
    %15 = vector.broadcast %cst_8 : f32 to vector<8x1xf32>
    %16 = arith.maximumf %14, %15 : vector<8x1xf32>
    %17 = math.rsqrt %16 : vector<8x1xf32>
    %18 = vector.broadcast %11 : vector<8x1xf32> to vector<8x128xf32>
    %19 = arith.mulf %2, %18 : vector<8x128xf32>
    %20 = vector.broadcast %17 : vector<8x1xf32> to vector<8x128xf32>
    %21 = arith.mulf %3, %20 : vector<8x128xf32>
    %22 = arith.mulf %19, %21 : vector<8x128xf32>
    %cst_9 = arith.constant dense<0.000000e+00> : vector<8xf32>
    %23 = vector.multi_reduction <add>, %22, %cst_9 [1] : vector<8x128xf32> to vector<8xf32>
    %24 = vector.shape_cast %23 : vector<8xf32> to vector<8x1xf32>
    %c0_10 = arith.constant 0 : index
    %c0_11 = arith.constant 0 : index
    %25 = vector.load %arg6[%c0_10, %c0_11] : memref<8x1xf32, #tpu.memory_space<vmem>>, vector<8x1xf32>
    tpu.vector_store %arg6[%c0_10, %c0_11], %24 {strides = array<i32>} : memref<8x1xf32, #tpu.memory_space<vmem>>, vector<8x1xf32>,
    %c0_12 = arith.constant 0 : index
    %c0_13 = arith.constant 0 : index
    %26 = vector.load %arg4[%c0_12, %c0_13] : memref<8x128xf32, #tpu.memory_space<vmem>>, vector<8x128xf32>
    tpu.vector_store %arg4[%c0_12, %c0_13], %19 {strides = array<i32>} : memref<8x128xf32, #tpu.memory_space<vmem>>, vector<8x128xf32>,
    %c0_14 = arith.constant 0 : index
    %c0_15 = arith.constant 0 : index
    %27 = vector.load %arg5[%c0_14, %c0_15] : memref<8x128xf32, #tpu.memory_space<vmem>>, vector<8x128xf32>
    tpu.vector_store %arg5[%c0_14, %c0_15], %21 {strides = array<i32>} : memref<8x128xf32, #tpu.memory_space<vmem>>, vector<8x128xf32>,
    return
  }
  func.func @transform_0(%arg0: i32) -> (i32, i32) {
    %c0_i32 = arith.constant 0 : i32
    %c0_i32_0 = arith.constant 0 : i32
    %c0_i32_1 = arith.constant 0 : i32
    return %c0_i32, %c0_i32_0 : i32, i32
  }
  func.func @transform_1(%arg0: i32) -> (i32, i32) {
    %c0_i32 = arith.constant 0 : i32
    %c0_i32_0 = arith.constant 0 : i32
    return %arg0, %c0_i32 : i32, i32
  }
  func.func @transform_2(%arg0: i32) -> (i32, i32) {
    %c0_i32 = arith.constant 0 : i32
    %c0_i32_0 = arith.constant 0 : i32
    return %arg0, %c0_i32 : i32, i32
  }
  func.func @transform_3(%arg0: i32) -> (i32, i32) {
    %c0_i32 = arith.constant 0 : i32
    %c0_i32_0 = arith.constant 0 : i32
    return %arg0, %c0_i32 : i32, i32
  }
  func.func @transform_4(%arg0: i32) -> (i32, i32) {
    %c0_i32 = arith.constant 0 : i32
    %c0_i32_0 = arith.constant 0 : i32
    return %arg0, %c0_i32 : i32, i32
  }
  func.func @transform_5(%arg0: i32) -> (i32, i32) {
    %c0_i32 = arith.constant 0 : i32
    %c0_i32_0 = arith.constant 0 : i32
    return %arg0, %c0_i32 : i32, i32
  }
}

</mosaic_0001>

<bundles_post_ra>
// kernel: tpu_custom_call.1
= control target key start
LH: loop header
LB: loop body
LE: loop exit
PB: predicated region body
PF: predicated region fallthrough
CT: control target
= control target key end

     0   :  { %12 = vsyncpa [#allocation4], 0  ;;  %s257_s0 = inlined_call_operand.<no memory space> [shape: f32[1,1], index: 0, kind: input, shape index: {}]   ;;  %s258_s1 = inlined_call_operand.hbm [shape: f32[8,128], index: 1, kind: input, shape index: {}]   ;;  %s259_s2 = inlined_call_operand.hbm [shape: f32[8,128], index: 2, kind: input, shape index: {}]   ;;  %s260_s3 = inlined_call_operand.hbm [shape: f32[8,128], index: 3, kind: output, shape index: {0}]   ;;  %s261_s4 = inlined_call_operand.hbm [shape: f32[8,128], index: 4, kind: output, shape index: {1}]   ;;  %s262_s5 = inlined_call_operand.vmem [shape: f32[8,1], index: 5, kind: output, shape index: {2}]  }
   0x1   :  { %13 = vsyncpa [#allocation7], 0 }
   0x2   :  { %14 = vsyncpa [#allocation5], 0 }
   0x3   :  { %15 = vsyncpa [#allocation10], 0  ;;  %s205_s18 = smov [#allocation3]   ;;  %s206_s20 = smov [#allocation6]  }
   0x4   :  { %s24_s19 = sshll.u32 %s205_s18, 4  ;;  %s34_s21 = sshll.u32 %s206_s20, 4  ;;  %s25_s19 = int_to_ptr.vmem [resolvable:$true] %s24_s19  ;;  %s35_s21 = int_to_ptr.vmem [resolvable:$true] %s34_s21 }
   0x5   :  { %s125_s22 = scalar_lea.vmem %s25_s19, 128  ;;  %p130_p1 = scmp.lt.s32.totalorder %s25_s19, %s25_s19 }
   0x6   :  { %p126_p0 = scmp.ne.s32.totalorder %s25_s19, %s125_s22  ;;  %p131_p2 = scmp.lt.s32.totalorder %s125_s22, %s125_s22 }
   0x8   :  { %p132_p3 = por %p131_p2, %p130_p1 }
   0xa   :  { %p133_p4 = pnand %p132_p3, %p126_p0 }
   0xc   :  { %136 = shalt.err (!%p133_p4)
}
   0xd   :  { %27 = dma.hbm_to_vmem [thread:$0]  %s258_s1, 128, %s25_s19, [#allocation4]  }
   0xe   :  { %s145_s25 = scalar_lea.vmem %s35_s21, 128  ;;  %p150_p6 = scmp.lt.s32.totalorder %s35_s21, %s35_s21 }
   0xf   :  { %p146_p5 = scmp.ne.s32.totalorder %s35_s21, %s145_s25  ;;  %p151_p7 = scmp.lt.s32.totalorder %s145_s25, %s145_s25 }
  0x11   :  { %p152_p8 = por %p151_p7, %p150_p6 }
  0x13   :  { %p153_p9 = pnand %p152_p8, %p146_p5 }
  0x15   :  { %156 = shalt.err (!%p153_p9)
}
  0x16   :  { %37 = dma.hbm_to_vmem [thread:$0]  %s259_s2, 128, %s35_s21, [#allocation7]  }
  0x17   :  { %197 = dma.done.wait [#allocation4], 128  }
  0x18   :  { %198 = vsyncadd [#allocation4], 4294967168 }
  0x19   :  { %199 = dma.done.wait [#allocation7], 128  }
  0x1a   :  { %200 = vsyncadd [#allocation7], 4294967168  ;;  %v45_v0 = vstv %s257_s0  ;;  %v48_v1 = vld [vmem:[#allocation3] sm:$0xff]  ;;  %v49_v2 = vld [vmem:[#allocation6] sm:$0xff]  ;;  %s207_s0 = smov [#allocation8]   ;;  %s208_s30 = smov [#allocation9]  }
  0x1b   :  { %111 = vrcp.f32 %v45_v0  ;;  %v50_v3 = vmul.f32 %v48_v1, %v48_v1  ;;  %v57_v4 = vmul.f32 %v49_v2, %v49_v2  ;;  %s77_s2 = sshll.u32 %s207_s0, 4  ;;  %s87_s6 = sshll.u32 %s208_s30, 4  ;;  %s78_s2 = int_to_ptr.vmem [resolvable:$true] %s77_s2  ;;  %s88_s6 = int_to_ptr.vmem [resolvable:$true] %s87_s6 }
  0x1c   :  { %s157_s7 = scalar_lea.vmem %s78_s2, 128  ;;  %p162_p11 = scmp.lt.s32.totalorder %s78_s2, %s78_s2 }
  0x1d   :  { %51 = vadd.xlane.f32.xlu0 %v50_v3  ;;  %p158_p10 = scmp.ne.s32.totalorder %s78_s2, %s157_s7  ;;  %p163_p12 = scmp.lt.s32.totalorder %s157_s7, %s157_s7 }
  0x1f   :  { %p164_p13 = por %p163_p12, %p162_p11 }
  0x21   :  { %58 = vadd.xlane.f32.xlu0 %v57_v4  ;;  %p165_p0 = pnand %p164_p13, %p158_p10 }
  0x28   :  { %v112_v5 = vpop.eup %111 }
  0x29   :  { %105 = vpush %v112_v5 }
  0x5a   :  { %s106_s1 = spop %105 }
  0x5b   :  { %v55_v10 = vstv %s106_s1 }
  0xa6   :  { %v52_v6 = vpop.xlane.xlu0 %51 }
  0xa7   :  { %v53_v7 = vmax.f32 %v52_v6, 1e-24 }
  0xa9   :  { %113 = vrsqrt.f32 %v53_v7 }
  0xaa   :  { %v59_v8 = vpop.xlane.xlu0 %58 }
  0xab   :  { %v60_v9 = vmax.f32 %v59_v8, 1e-24 }
  0xad   :  { %115 = vrsqrt.f32 %v60_v9 }
  0xb6   :  { %v114_v11 = vpop.eup %113 }
  0xb7   :  { %v56_v12 = vmul.f32 %v114_v11, %v55_v10 }
  0xb9   :  { %v62_v13 = vmul.f32 %v56_v12, %v48_v1 }
  0xba   :  { %v116_v14 = vpop.eup %115 }
  0xbb   :  { %v63_v15 = vmul.f32 %v116_v14, %v49_v2  ;;  %69 = vst [vmem:[#allocation8] sm:$0xff] %v62_v13 }
  0xbd   :  { %v64_v16 = vmul.f32 %v63_v15, %v62_v13  ;;  %70 = vst [vmem:[#allocation9] sm:$0xff] %v63_v15 }
  0xbf   :  { %65 = vadd.xlane.f32.xlu1 %v64_v16 }
  0xc0   :  { %168 = shalt.err (!%p165_p0)
}
  0xc1   :  { %80 = dma.vmem_to_hbm [thread:$0]  %s78_s2, 128, %s260_s3, [#allocation5]  }
  0xc2   :  { %s177_s10 = scalar_lea.vmem %s88_s6, 128  ;;  %p182_p2 = scmp.lt.s32.totalorder %s88_s6, %s88_s6 }
  0xc3   :  { %p178_p1 = scmp.ne.s32.totalorder %s88_s6, %s177_s10  ;;  %p183_p3 = scmp.lt.s32.totalorder %s177_s10, %s177_s10 }
  0xc5   :  { %p184_p4 = por %p183_p3, %p182_p2 }
  0xc7   :  { %p185_p5 = pnand %p184_p4, %p178_p1 }
  0xc9   :  { %188 = shalt.err (!%p185_p5)
}
  0xca   :  { %90 = dma.vmem_to_hbm [thread:$0]  %s88_s6, 128, %s261_s4, [#allocation10]   ;;  %vm67_vm0 = vcmask 7168  }
 0x148   :  { %v66_v17 = vpop.xlane.xlu1 %65 }
 0x149   :  { %68 = vst.msk [vmem:[%s262_s5] sm:$0xff] %vm67_vm0, %v66_v17 }
 0x14a   :  { %201 = dma.done.wait [#allocation5], 128  }
 0x14b   :  { %202 = vsyncadd [#allocation5], 4294967168 }
 0x14c   :  { %203 = dma.done.wait [#allocation10], 128  }
 0x14d   :  { %204 = vsyncadd [#allocation10], 4294967168 }
 0x14e   :  { %101 = vsyncpa [#allocation4], 1 }
 0x14f   :  { %102 = vsyncpa [#allocation7], 1 }
 0x150   :  { %103 = vsyncpa [#allocation5], 1 }
 0x151   :  { %104 = vsyncpa [#allocation10], 1 }

</bundles_post_ra>
